<compile_context>
chip_gen: v5e
topology: v5e:2x2
jax: 0.10.0
libtpu: 0.0.40
codegen_flags: <defaults>
</compile_context>

<pallas_src>
import functools

import jax
import jax.numpy as jnp
from jax.experimental import pallas as pl
from jax.experimental.pallas import tpu as pltpu  # noqa: F401  (TPU backend)


def _network_kernel(x_ref, *refs, n_blocks, ff):
    """Fused forward over all blocks.

    x_ref:            [B, D_in]          input activations (f32)
    refs[:n_blocks]:  [D_in_i, D_out_i]  per-block weights, already [in, out]
    refs[n_blocks]:   output ref
        ff=True :     [n_blocks, B, D_out]  stacked post-ReLU activations
        ff=False:     [B, D_out]            final ReLU output
    """
    w_refs = refs[:n_blocks]
    out_ref = refs[n_blocks]

    act = x_ref[...]  # f32 in, f32 math throughout (dtype-honest, no casts)
    for i in range(n_blocks):
        if i > 0:
            # F.normalize(x, dim=1): x / max(||x||, 1e-12)
            #   == x * rsqrt(max(||x||^2, 1e-24)).
            # Per-row scalar => hoist past the matmul:
            #   (s * act) @ W == s * (act @ W), so the XLU lane-reduce and
            # EUP rsqrt overlap the MXU instead of serializing in front of it.
            sq = jnp.sum(act * act, axis=1, keepdims=True)
            s = jax.lax.rsqrt(jnp.maximum(sq, 1e-24))
            pre = jnp.dot(act, w_refs[i][...],
                          preferred_element_type=jnp.float32) * s
        else:
            pre = jnp.dot(act, w_refs[i][...],
                          preferred_element_type=jnp.float32)
        # nn.ReLU(inplace=True) mutates the tensor saved as Block.x, so the
        # stored ff activation is the post-ReLU value for every block.
        act = jnp.maximum(pre, 0.0)
        if ff:
            out_ref[i] = act  # contiguous (B, D_out) full-tile store

    if not ff:
        out_ref[...] = act


def network_forward(x, weights, ff=True, cat=True):
    """Mirrors Network.forward with a single fused pallas_call.

    weights[i] has shape [D_in_i, D_out_i]  (i.e. nn.Linear.weight.T).
    Block 0: no input normalization. Blocks 1..n-1: F.normalize(dim=1) first.
    ff=True : stacked post-ReLU activations [B, n_blocks, D_out]
              (or a list of [B, D_out] arrays when cat=False).
    ff=False: final ReLU output [B, D_out].
    """
    B, _ = x.shape
    n_blocks = len(weights)
    d_out = weights[-1].shape[1]

    kernel = functools.partial(_network_kernel, n_blocks=n_blocks, ff=ff)

    if ff:
        # Block-major layout: full (B, d_out) tile store per block in-kernel.
        out_shape = jax.ShapeDtypeStruct((n_blocks, B, d_out), jnp.float32)
        out_spec = pl.BlockSpec((n_blocks, B, d_out), lambda: (0, 0, 0))
    else:
        out_shape = jax.ShapeDtypeStruct((B, d_out), jnp.float32)
        out_spec = pl.BlockSpec((B, d_out), lambda: (0, 0))

    in_specs = [pl.BlockSpec(x.shape, lambda: (0, 0))]
    for w in weights:
        in_specs.append(pl.BlockSpec(w.shape, lambda: (0, 0)))

    # Advisory cost hint so XLA schedules neighbors around this tiny call.
    flops = 0
    bytes_accessed = x.size * 4
    for w in weights:
        flops += 2 * B * w.shape[0] * w.shape[1]
        bytes_accessed += w.size * 4
    bytes_accessed += (n_blocks * B * d_out if ff else B * d_out) * 4
    cost = pl.CostEstimate(flops=flops,
                           transcendentals=(n_blocks - 1) * B,
                           bytes_accessed=bytes_accessed)

    out = pl.pallas_call(
        kernel,
        out_shape=out_shape,
        in_specs=in_specs,
        out_specs=out_spec,
        cost_estimate=cost,
    )(x, *weights)

    if not ff:
        return out
    if not cat:
        # Leading-dim slices of (n_blocks, B, d_out) are layout-free views.
        return [out[i] for i in range(n_blocks)]
    # torch.stack(xs, dim=1) layout: (B, n_blocks, d_out).  6 KiB transpose.
    return jnp.transpose(out, (1, 0, 2))


def init_network_params(key, dims):
    """Deterministic stand-in for nn.Linear default init, stored as [in, out]."""
    weights = []
    for i in range(len(dims) - 1):
        key, sub = jax.random.split(key)
        fan_in = dims[i]
        bound = 1.0 / jnp.sqrt(fan_in)
        # [D_in, D_out] == torch Linear weight.T (pre-transposed for the MXU)
        w = jax.random.uniform(
            sub, (dims[i], dims[i + 1]), jnp.float32, minval=-bound, maxval=bound
        )
        weights.append(w)
    return weights


def _reference_forward(x, weights, ff=True, cat=True):
    """Pure-JAX reference mirroring the PyTorch module (incl. inplace ReLU)."""
    xs = []
    act = x
    for i, w in enumerate(weights):
        if i > 0:
            denom = jnp.maximum(
                jnp.sqrt(jnp.sum(act * act, axis=1, keepdims=True)), 1e-12
            )
            act = act / denom
        pre = act @ w
        act = jnp.maximum(pre, 0.0)
        xs.append(act)  # Block.x aliases the inplace-ReLU'd tensor
    if not ff:
        return act
    if not cat:
        return xs
    return jnp.stack(xs, axis=1)


if __name__ == "__main__":
    key = jax.random.PRNGKey(0)
    # dims: input 32, three blocks all producing 64 features (torch.stack in
    # Network.forward requires equal out dims across blocks).
    dims = [32, 64, 64, 64]
    B = 8

    key, kx, kw = jax.random.split(key, 3)
    x = jax.random.normal(kx, (B, dims[0]), jnp.float32)
    weights = init_network_params(kw, dims)

    # ff=True, cat=True (Network default): [B, n_blocks, D_out]
    out = network_forward(x, weights, ff=True, cat=True)
    out = jax.block_until_ready(out)
    ref = _reference_forward(x, weights, ff=True, cat=True)
    assert out.shape == (B, len(dims) - 1, dims[-1]), out.shape
    assert jnp.allclose(out, ref, atol=1e-5, rtol=1e-4), "ff=True cat=True mismatch"

    # ff=True, cat=False: list of per-block [B, D_out] activations
    outs = network_forward(x, weights, ff=True, cat=False)
    outs = jax.block_until_ready(outs)
    refs = _reference_forward(x, weights, ff=True, cat=False)
    assert len(outs) == len(dims) - 1
    for o, r in zip(outs, refs):
        assert o.shape == (B, dims[-1]), o.shape
        assert jnp.allclose(o, r, atol=1e-5, rtol=1e-4), "ff=True cat=False mismatch"

    # ff=False: final ReLU output [B, D_out]
    out_nf = network_forward(x, weights, ff=False)
    out_nf = jax.block_until_ready(out_nf)
    ref_nf = _reference_forward(x, weights, ff=False)
    assert out_nf.shape == (B, dims[-1]), out_nf.shape
    assert jnp.allclose(out_nf, ref_nf, atol=1e-5, rtol=1e-4), "ff=False mismatch"

    print("KERNEL_OK")
</pallas_src>

<mosaic_0001>
module attributes {stable_mosaic.version = 11 : i64} {
  func.func @_network_kernel(%arg0: memref<8x32xf32, #tpu.memory_space<vmem>>, %arg1: memref<32x64xf32, #tpu.memory_space<vmem>>, %arg2: memref<64x64xf32, #tpu.memory_space<vmem>>, %arg3: memref<64x64xf32, #tpu.memory_space<vmem>>, %arg4: memref<3x8x64xf32, #tpu.memory_space<vmem>>) attributes {dimension_semantics = [], scalar_prefetch = 0 : i64, scratch_operands = 0 : i64, tpu.core_type = #tpu.core_type<tc>} {
    %c0 = arith.constant 0 : index
    %c0_0 = arith.constant 0 : index
    %0 = vector.load %arg0[%c0, %c0_0] : memref<8x32xf32, #tpu.memory_space<vmem>>, vector<8x32xf32>
    %c0_1 = arith.constant 0 : index
    %c0_2 = arith.constant 0 : index
    %1 = vector.load %arg1[%c0_1, %c0_2] : memref<32x64xf32, #tpu.memory_space<vmem>>, vector<32x64xf32>
    %cst = arith.constant dense<0.000000e+00> : vector<8x64xf32>
    %2 = tpu.matmul %0, %1, %cst {dimension_numbers = #tpu.dot_dimension_numbers<[1], [0], [0], [1], [0, 0, 1, 1], [], []>} : vector<8x32xf32>, vector<32x64xf32>, vector<8x64xf32> -> vector<8x64xf32>
    %cst_3 = arith.constant 0.000000e+00 : f32
    %3 = vector.broadcast %cst_3 : f32 to vector<8x64xf32>
    %4 = arith.maximumf %2, %3 : vector<8x64xf32>
    %c0_4 = arith.constant 0 : index
    %c0_5 = arith.constant 0 : index
    %c0_6 = arith.constant 0 : index
    %5 = vector.load %arg4[%c0_4, %c0_5, %c0_6] : memref<3x8x64xf32, #tpu.memory_space<vmem>>, vector<1x8x64xf32>
    %6 = vector.shape_cast %5 : vector<1x8x64xf32> to vector<8x64xf32>
    %7 = vector.shape_cast %4 : vector<8x64xf32> to vector<1x8x64xf32>
    tpu.vector_store %arg4[%c0_4, %c0_5, %c0_6], %7 {strides = array<i32>} : memref<3x8x64xf32, #tpu.memory_space<vmem>>, vector<1x8x64xf32>,
    %8 = arith.mulf %4, %4 : vector<8x64xf32>
    %cst_7 = arith.constant dense<0.000000e+00> : vector<8xf32>
    %9 = vector.multi_reduction <add>, %8, %cst_7 [1] : vector<8x64xf32> to vector<8xf32>
    %10 = vector.shape_cast %9 : vector<8xf32> to vector<8x1xf32>
    %cst_8 = arith.constant 1.000000e-24 : f32
    %11 = vector.broadcast %cst_8 : f32 to vector<8x1xf32>
    %12 = arith.maximumf %10, %11 : vector<8x1xf32>
    %13 = math.rsqrt %12 : vector<8x1xf32>
    %c0_9 = arith.constant 0 : index
    %c0_10 = arith.constant 0 : index
    %14 = vector.load %arg2[%c0_9, %c0_10] : memref<64x64xf32, #tpu.memory_space<vmem>>, vector<64x64xf32>
    %cst_11 = arith.constant dense<0.000000e+00> : vector<8x64xf32>
    %15 = tpu.matmul %4, %14, %cst_11 {dimension_numbers = #tpu.dot_dimension_numbers<[1], [0], [0], [1], [0, 0, 1, 1], [], []>} : vector<8x64xf32>, vector<64x64xf32>, vector<8x64xf32> -> vector<8x64xf32>
    %16 = vector.broadcast %13 : vector<8x1xf32> to vector<8x64xf32>
    %17 = arith.mulf %15, %16 : vector<8x64xf32>
    %cst_12 = arith.constant 0.000000e+00 : f32
    %18 = vector.broadcast %cst_12 : f32 to vector<8x64xf32>
    %19 = arith.maximumf %17, %18 : vector<8x64xf32>
    %c1 = arith.constant 1 : index
    %c0_13 = arith.constant 0 : index
    %c0_14 = arith.constant 0 : index
    %20 = vector.load %arg4[%c1, %c0_13, %c0_14] : memref<3x8x64xf32, #tpu.memory_space<vmem>>, vector<1x8x64xf32>
    %21 = vector.shape_cast %20 : vector<1x8x64xf32> to vector<8x64xf32>
    %22 = vector.shape_cast %19 : vector<8x64xf32> to vector<1x8x64xf32>
    tpu.vector_store %arg4[%c1, %c0_13, %c0_14], %22 {strides = array<i32>} : memref<3x8x64xf32, #tpu.memory_space<vmem>>, vector<1x8x64xf32>,
    %23 = arith.mulf %19, %19 : vector<8x64xf32>
    %cst_15 = arith.constant dense<0.000000e+00> : vector<8xf32>
    %24 = vector.multi_reduction <add>, %23, %cst_15 [1] : vector<8x64xf32> to vector<8xf32>
    %25 = vector.shape_cast %24 : vector<8xf32> to vector<8x1xf32>
    %cst_16 = arith.constant 1.000000e-24 : f32
    %26 = vector.broadcast %cst_16 : f32 to vector<8x1xf32>
    %27 = arith.maximumf %25, %26 : vector<8x1xf32>
    %28 = math.rsqrt %27 : vector<8x1xf32>
    %c0_17 = arith.constant 0 : index
    %c0_18 = arith.constant 0 : index
    %29 = vector.load %arg3[%c0_17, %c0_18] : memref<64x64xf32, #tpu.memory_space<vmem>>, vector<64x64xf32>
    %cst_19 = arith.constant dense<0.000000e+00> : vector<8x64xf32>
    %30 = tpu.matmul %19, %29, %cst_19 {dimension_numbers = #tpu.dot_dimension_numbers<[1], [0], [0], [1], [0, 0, 1, 1], [], []>} : vector<8x64xf32>, vector<64x64xf32>, vector<8x64xf32> -> vector<8x64xf32>
    %31 = vector.broadcast %28 : vector<8x1xf32> to vector<8x64xf32>
    %32 = arith.mulf %30, %31 : vector<8x64xf32>
    %cst_20 = arith.constant 0.000000e+00 : f32
    %33 = vector.broadcast %cst_20 : f32 to vector<8x64xf32>
    %34 = arith.maximumf %32, %33 : vector<8x64xf32>
    %c2 = arith.constant 2 : index
    %c0_21 = arith.constant 0 : index
    %c0_22 = arith.constant 0 : index
    %35 = vector.load %arg4[%c2, %c0_21, %c0_22] : memref<3x8x64xf32, #tpu.memory_space<vmem>>, vector<1x8x64xf32>
    %36 = vector.shape_cast %35 : vector<1x8x64xf32> to vector<8x64xf32>
    %37 = vector.shape_cast %34 : vector<8x64xf32> to vector<1x8x64xf32>
    tpu.vector_store %arg4[%c2, %c0_21, %c0_22], %37 {strides = array<i32>} : memref<3x8x64xf32, #tpu.memory_space<vmem>>, vector<1x8x64xf32>,
    return
  }
}

</mosaic_0001>

<bundles_post_ra>
// kernel: tpu_custom_call.1
= control target key start
LH: loop header
LB: loop body
LE: loop exit
PB: predicated region body
PF: predicated region fallthrough
CT: control target
= control target key end

     0   :  { %9 = vsyncpa [#allocation3], 0  ;;  %s440_s0 = inlined_call_operand.hbm [shape: f32[8,32], index: 0, kind: input, shape index: {}]   ;;  %s441_s1 = inlined_call_operand.hbm [shape: f32[32,64], index: 1, kind: input, shape index: {}]   ;;  %s442_s2 = inlined_call_operand.hbm [shape: f32[64,64], index: 2, kind: input, shape index: {}]   ;;  %s443_s3 = inlined_call_operand.hbm [shape: f32[64,64], index: 3, kind: input, shape index: {}]   ;;  %s444_s4 = inlined_call_operand.hbm [shape: f32[3,8,64], index: 4, kind: output, shape index: {}]  }
   0x1   :  { %10 = vsyncpa [#allocation6], 0 }
   0x2   :  { %11 = vsyncpa [#allocation9], 0  ;;  %s28_s17 = sshll.u32 %s441_s1, 4  ;;  %s29_s17 = int_to_ptr.hbm [resolvable:$true] %s28_s17 }
   0x3   :  { %12 = vsyncpa [#allocation4], 0  ;;  %s374_s18 = smov [#allocation5]   ;;  %s18_s22 = sshll.u32 %s440_s0, 4  ;;  %s19_s22 = int_to_ptr.hbm [resolvable:$true] %s18_s22 }
   0x4   :  { %s30_s19 = sshll.u32 %s374_s18, 4  ;;  %s375_s23 = smov 128   ;;  %s31_s19 = int_to_ptr.vmem [resolvable:$true] %s30_s19 }
   0x5   :  { %s376_s24 = smov 8   ;;  %s377_s25 = smov [#allocation2]  }
   0x6   :  { %36 = dma.hbm_to_vmem [thread:$0]  %s29_s17, 512, %s31_s19, [#allocation6], %s375_s23, %s375_s23, %s376_s24  }
   0x7   :  { %s20_s26 = sshll.u32 %s377_s25, 4  ;;  %s41_s28 = sshll.u32 %s442_s2, 4  ;;  %s21_s26 = int_to_ptr.vmem [resolvable:$true] %s20_s26  ;;  %s42_s28 = int_to_ptr.hbm [resolvable:$true] %s41_s28 }
   0x8   :  { %23 = dma.hbm_to_vmem [thread:$0]  %s19_s22, 128, %s21_s26, [#allocation3]  }
   0x9   :  { %s54_s0 = sshll.u32 %s443_s3, 4  ;;  %s378_s5 = smov [#allocation7]   ;;  %s55_s0 = int_to_ptr.hbm [resolvable:$true] %s54_s0 }
   0xa   :  { %s43_s6 = sshll.u32 %s378_s5, 4  ;;  %s379_s7 = smov [#allocation8]   ;;  %s44_s6 = int_to_ptr.vmem [resolvable:$true] %s43_s6 }
   0xb   :  { %49 = dma.hbm_to_vmem [thread:$0]  %s42_s28, 1024, %s44_s6, [#allocation6], %s375_s23, %s375_s23, %s376_s24  }
   0xc   :  { %s56_s8 = sshll.u32 %s379_s7, 4  ;;  %s57_s8 = int_to_ptr.vmem [resolvable:$true] %s56_s8 }
   0xd   :  { %62 = dma.hbm_to_vmem [thread:$0]  %s55_s0, 1024, %s57_s8, [#allocation9], %s375_s23, %s375_s23, %s376_s24  }
   0xe   :  { %366 = dma.done.wait [#allocation3], 128  }
   0xf   :  { %367 = vsyncadd [#allocation3], 4294967168 }
  0x10   :  { %368 = dma.done.wait [#allocation6], 1536  }
  0x11   :  { %369 = vsyncadd [#allocation6], 4294965760 }
  0x12   :  { %370 = dma.done.wait [#allocation9], 1024  }
  0x13   :  { %371 = vsyncadd [#allocation9], 4294966272  ;;  %v83_v0 = vld [vmem:[#allocation5 + $0x18] sm:$0xff]  ;;  %v82_v1 = vld [vmem:[#allocation5 + $0x10] sm:$0xff]  ;;  %vm84_vm0 = vcmask 261120   ;;  %vm109_vm1 = vcmask 523264  }
  0x14   :  { %100 = vmatpush.msra.mxu0 %v83_v0  ;;  %v133_v2 = vld [vmem:[#allocation7 + $0x38] sm:$0xff]  ;;  %v81_v3 = vld [vmem:[#allocation5 + $0x8] sm:$0xff]  ;;  %v132_v4 = vld [vmem:[#allocation7 + $0x30] sm:$0xff]  ;;  %s380_s2 = smov [#allocation10]   ;;  %s217_s11 = sshll.u32 %s444_s4, 4  ;;  %s218_s11 = int_to_ptr.hbm [resolvable:$true] %s217_s11 }
  0x15   :  { %145 = vmatpush.msra.mxu1 %v133_v2  ;;  %v131_v5 = vld [vmem:[#allocation7 + $0x28] sm:$0xff]  ;;  %v80_v6 = vld [vmem:[#allocation5] sm:$0xff]  ;;  %v79_v7 = vld [vmem:[#allocation2] sm:$0xff]  ;;  %s215_s3 = sshll.u32 %s380_s2, 4  ;;  %s216_s3 = int_to_ptr.vmem [resolvable:$true] %s215_s3 }
  0x16   :  { %101 = vmatpush.msra.mxu0 %v82_v1  ;;  %v130_v8 = vld [vmem:[#allocation7 + $0x20] sm:$0xff]  ;;  %v129_v9 = vld [vmem:[#allocation7 + $0x18] sm:$0xff]  ;;  %v128_v10 = vld [vmem:[#allocation7 + $0x10] sm:$0xff] }
  0x17   :  { %146 = vmatpush.msra.mxu1 %v132_v4  ;;  %v127_v11 = vld [vmem:[#allocation7 + $0x8] sm:$0xff]  ;;  %v126_v12 = vld [vmem:[#allocation7] sm:$0xff]  ;;  %v183_v17 = vld [vmem:[#allocation8 + $0x38] sm:$0xff] }
  0x18   :  { %102 = vmatpush.msra.mxu0 %v81_v3  ;;  %195 = vmatpush.msra.mxu2 %v183_v17  ;;  %v182_v18 = vld [vmem:[#allocation8 + $0x30] sm:$0xff]  ;;  %v181_v19 = vld [vmem:[#allocation8 + $0x28] sm:$0xff]  ;;  %v180_v20 = vld [vmem:[#allocation8 + $0x20] sm:$0xff] }
  0x19   :  { %147 = vmatpush.msra.mxu1 %v131_v5  ;;  %v179_v21 = vld [vmem:[#allocation8 + $0x18] sm:$0xff]  ;;  %v178_v22 = vld [vmem:[#allocation8 + $0x10] sm:$0xff]  ;;  %v177_v23 = vld [vmem:[#allocation8 + $0x8] sm:$0xff] }
  0x1a   :  { %103 = vmatpush.msra.mxu0 %v80_v6  ;;  %196 = vmatpush.msra.mxu2 %v182_v18  ;;  %v176_v24 = vld [vmem:[#allocation8] sm:$0xff] }
  0x1b   :  { %232 = vmatmul.msk.f32.vlgmr.msra.gmra.mxu0 %vm84_vm0, %v79_v7  ;;  %148 = vmatpush.msra.mxu1 %v130_v8 }
  0x1c   :  { %197 = vmatpush.msra.mxu2 %v181_v19 }
  0x1d   :  { %149 = vmatpush.msra.mxu1 %v129_v9 }
  0x1e   :  { %198 = vmatpush.msra.mxu2 %v180_v20 }
  0x1f   :  { %150 = vmatpush.msra.mxu1 %v128_v10 }
  0x20   :  { %199 = vmatpush.msra.mxu2 %v179_v21 }
  0x21   :  { %151 = vmatpush.msra.mxu1 %v127_v11 }
  0x22   :  { %200 = vmatpush.msra.mxu2 %v178_v22 }
  0x23   :  { %152 = vmatpush.msra.mxu1 %v126_v12 }
  0x24   :  { %201 = vmatpush.msra.mxu2 %v177_v23 }
  0x26   :  { %202 = vmatpush.msra.mxu2 %v176_v24 }
  0x98   :  { %v105_v13 = vpop.f32.mrf.mxu0 }
  0x99   :  { %v108_v14 = vmax.f32 %v105_v13, 0.0 }
  0x9b   :  { %110 = vst.msk [vmem:[#allocation10] sm:$0xff] %vm109_vm1, %v108_v14  ;;  %233 = vmatmul.msk.f32.vlgmr.msra.gmra.mxu1 %vm109_vm1, %v108_v14  ;;  %v111_v15 = vmul.f32 %v108_v14, %v108_v14 }
  0x9d   :  { %v112_v16 = vsel %vm109_vm1, %v111_v15, 0.0 }
  0x9e   :  { %113 = vadd.xlane.f32.xlu0 %v112_v16 }
 0x111   :  { %v114_v25 = vpop.xlane.xlu0 %113 }
 0x112   :  { %v115_v26 = vmax.f32 %v114_v25, 1e-24 }
 0x114   :  { %242 = vrsqrt.f32 %v115_v26  ;;  %vm122_vm3 = vweird.f32 %v115_v26 }
 0x118   :  { %v154_v34 = vpop.f32.mrf.mxu1 }
 0x11a   :  { %v243_v27 = vpop.eup %242 }
 0x11b   :  { %v117_v28 = vmul.f32 %v243_v27, %v115_v26  ;;  %vm123_vm2 = vweird.f32 %v243_v27 }
 0x11c   :  { %vm124_vm4 = vmor %vm122_vm3, %vm123_vm2 }
 0x11d   :  { %v118_v29 = vmul.f32 %v243_v27, %v117_v28 }
 0x11f   :  { %v119_v30 = vmul.f32 0.5, %v118_v29 }
 0x121   :  { %v120_v31 = vsub.f32 1.5, %v119_v30 }
 0x123   :  { %v121_v32 = vmul.f32 %v243_v27, %v120_v31 }
 0x125   :  { %v125_v33 = vsel %vm124_vm4, %v243_v27, %v121_v32 }
 0x126   :  { %v157_v35 = vmul.f32 %v154_v34, %v125_v33 }
 0x128   :  { %v158_v36 = vmax.f32 %v157_v35, 0.0 }
 0x12a   :  { %160 = vst.msk [vmem:[#allocation10 + $0x8] sm:$0xff] %vm109_vm1, %v158_v36  ;;  %234 = vmatmul.msk.f32.vlgmr.msra.gmra.mxu2 %vm109_vm1, %v158_v36  ;;  %v161_v37 = vmul.f32 %v158_v36, %v158_v36 }
 0x12c   :  { %v162_v38 = vsel %vm109_vm1, %v161_v37, 0.0 }
 0x12d   :  { %163 = vadd.xlane.f32.xlu0 %v162_v38 }
 0x1a0   :  { %v164_v39 = vpop.xlane.xlu0 %163 }
 0x1a1   :  { %v165_v40 = vmax.f32 %v164_v39, 1e-24 }
 0x1a3   :  { %244 = vrsqrt.f32 %v165_v40  ;;  %vm172_vm6 = vweird.f32 %v165_v40 }
 0x1a9   :  { %v245_v41 = vpop.eup %244 }
 0x1aa   :  { %v167_v42 = vmul.f32 %v245_v41, %v165_v40  ;;  %vm173_vm5 = vweird.f32 %v245_v41 }
 0x1ab   :  { %vm174_vm7 = vmor %vm172_vm6, %vm173_vm5 }
 0x1ac   :  { %v168_v43 = vmul.f32 %v245_v41, %v167_v42 }
 0x1ad   :  { %v204_v48 = vpop.f32.mrf.mxu2 }
 0x1ae   :  { %v169_v44 = vmul.f32 0.5, %v168_v43 }
 0x1b0   :  { %v170_v45 = vsub.f32 1.5, %v169_v44 }
 0x1b2   :  { %v171_v46 = vmul.f32 %v245_v41, %v170_v45 }
 0x1b4   :  { %v175_v47 = vsel %vm174_vm7, %v245_v41, %v171_v46 }
 0x1b5   :  { %v207_v49 = vmul.f32 %v204_v48, %v175_v47 }
 0x1b7   :  { %v208_v50 = vmax.f32 %v207_v49, 0.0 }
 0x1b9   :  { %210 = vst.msk [vmem:[#allocation10 + $0x10] sm:$0xff] %vm109_vm1, %v208_v50 }
 0x1ba   :  { %223 = dma.vmem_to_hbm [thread:$0]  %s216_s3, 384, %s218_s11, [#allocation4], %s375_s23, %s375_s23, %s376_s24  }
 0x1bb   :  { %372 = dma.done.wait [#allocation4], 384  }
 0x1bc   :  { %373 = vsyncadd [#allocation4], 4294966912 }
 0x1bd   :  { %228 = vsyncpa [#allocation3], 1 }
 0x1be   :  { %229 = vsyncpa [#allocation6], 1 }
 0x1bf   :  { %230 = vsyncpa [#allocation9], 1 }
 0x1c0   :  { %231 = vsyncpa [#allocation4], 1 }

</bundles_post_ra>
